<compile_context>
chip_gen: v7x
topology: tpu7x:2x2x1
jax: 0.10.0
libtpu: 0.0.40
codegen_flags: <defaults>
</compile_context>

<pallas_src>
import functools

import jax
import jax.numpy as jnp
from jax.experimental import pallas as pl
from jax.experimental.pallas import tpu as pltpu

HIDDEN = 32
LANES = 128
PACK = LANES // HIDDEN          # 4 hidden vectors packed per 128-lane row
DEFAULT_ROW_TILE = 4096         # 4096x128 f32 = 2 MiB per buffer


def _fused_affine_kernel(x_ref, w_ref, b_ref, o_ref):
    """Single fused affine layer on a lane-dense (tile, 128) block."""
    o_ref[...] = (
        jnp.dot(x_ref[...], w_ref[...], preferred_element_type=jnp.float32)
        + b_ref[...]
    ).astype(o_ref.dtype)


def _fuse_params(params):
    """Collapse q->k->v->o->mlp into one lane-dense (W_big, b_big)."""
    names = ["q", "k", "v", "o", "mlp"]
    w = params["w" + names[0]].astype(jnp.float32)   # (32, 32), (in, out)
    b = params["b" + names[0]].astype(jnp.float32)   # (1, 32)
    for n in names[1:]:
        wn = params["w" + n].astype(jnp.float32)
        bn = params["b" + n].astype(jnp.float32)
        w = w @ wn
        b = b @ wn + bn
    # 128x128 block-diagonal weight (W_fused on each 32x32 diagonal block)
    # and bias tiled 4x so each packed 32-lane slot gets the same affine map.
    w_big = jnp.kron(jnp.eye(PACK, dtype=jnp.float32), w)   # (128, 128)
    b_big = jnp.tile(b, (1, PACK))                            # (1, 128)
    return w_big, b_big


def _choose_tile(num_rows, max_tile):
    """Multiple-of-8 row tile; >=2 grid steps when there is enough work."""
    if num_rows <= 8:
        return 8
    half = -(-num_rows // 2)                     # ceil(R / 2)
    return min(max_tile, ((half + 7) // 8) * 8)


def _forward_impl(x, w_big, b_big, row_tile):
    B, S, H = x.shape
    assert H == HIDDEN
    M = B * S
    x2d = x.reshape(M, H)

    # Lane-dense packing: 4 hidden vectors per 128-lane row (contiguous
    # reshape, free under jit).  Only when M is not a multiple of 4 do we pad
    # a <=3-row tail (rare; zero cost in the common case).
    rem = M % PACK
    if rem:
        x2d = jnp.pad(x2d, ((0, PACK - rem), (0, 0)))
    Mp = x2d.shape[0]
    R = Mp // PACK
    xp = x2d.reshape(R, LANES)

    tile = _choose_tile(R, row_tile)
    grid = pl.cdiv(R, tile)        # ragged last block masked by Pallas

    out = pl.pallas_call(
        _fused_affine_kernel,
        out_shape=jax.ShapeDtypeStruct((R, LANES), x.dtype),
        grid=(grid,),
        in_specs=[
            pl.BlockSpec((tile, LANES), lambda i: (i, 0)),     # x rows stream
            pl.BlockSpec((LANES, LANES), lambda i: (0, 0)),    # fused weight
            pl.BlockSpec((1, LANES), lambda i: (0, 0)),        # fused bias
        ],
        out_specs=pl.BlockSpec((tile, LANES), lambda i: (i, 0)),
        compiler_params=pltpu.CompilerParams(
            dimension_semantics=("parallel",),   # v7x: shard rows across TCs
        ),
    )(xp, w_big, b_big)

    out2d = out.reshape(Mp, H)
    if rem:
        out2d = out2d[:M]
    return out2d.reshape(B, S, H)


def make_transformer_block(params, row_tile=DEFAULT_ROW_TILE):
    """Fuse the parameter chain ONCE and return a jitted forward fn."""
    w_big, b_big = jax.block_until_ready(_fuse_params(params))
    return jax.jit(
        functools.partial(_forward_impl, w_big=w_big, b_big=b_big,
                          row_tile=row_tile)
    )


def init_params(key):
    """nn.Linear default init: U(-1/sqrt(fan_in), +1/sqrt(fan_in))."""
    bound = 1.0 / jnp.sqrt(jnp.float32(HIDDEN))
    names = ["q", "k", "v", "o", "mlp"]
    params = {}
    keys = jax.random.split(key, 2 * len(names))
    for i, n in enumerate(names):
        # Weight stored already transposed to (in, out) for x @ W.
        params[f"w{n}"] = jax.random.uniform(
            keys[2 * i], (HIDDEN, HIDDEN), jnp.float32, -bound, bound
        )
        params[f"b{n}"] = jax.random.uniform(
            keys[2 * i + 1], (1, HIDDEN), jnp.float32, -bound, bound
        )
    return params


def reference_forward(x, params):
    """Pure-JAX reference of the PyTorch forward (5-step chain)."""
    h = x.astype(jnp.float32)
    for n in ["q", "k", "v", "o", "mlp"]:
        h = h @ params[f"w{n}"] + params[f"b{n}"][0]
    return h.astype(x.dtype)


if __name__ == "__main__":
    key = jax.random.PRNGKey(0)
    kp, kx = jax.random.split(key)

    params = init_params(kp)
    # Small shapes consistent with the module: batch=2, seq=8, hidden=32.
    x = jax.random.normal(kx, (2, 8, HIDDEN), jnp.float32)

    forward = make_transformer_block(params)
    out = jax.block_until_ready(forward(x))

    ref = reference_forward(x, params)
    assert out.shape == x.shape
    assert jnp.allclose(out, ref, atol=1e-5, rtol=1e-5)

    print("KERNEL_OK")
</pallas_src>

<mosaic_0001>
module attributes {stable_mosaic.version = 11 : i64} {
  func.func @_fused_affine_kernel(%arg0: i32, %arg1: memref<8x128xf32, #tpu.memory_space<vmem>>, %arg2: memref<128x128xf32, #tpu.memory_space<vmem>>, %arg3: memref<1x128xf32, #tpu.memory_space<vmem>>, %arg4: memref<8x128xf32, #tpu.memory_space<vmem>>) attributes {dimension_semantics = [#tpu.dimension_semantics<parallel>], iteration_bounds = array<i64: 1>, scalar_prefetch = 0 : i64, scratch_operands = 0 : i64, tpu.core_type = #tpu.core_type<tc>, window_params = [{transform_indices = @transform_0, window_bounds = array<i64: 8, 128>}, {pipeline_mode = #tpu.pipeline_mode<synchronous>, transform_indices = @transform_1, window_bounds = array<i64: 128, 128>}, {pipeline_mode = #tpu.pipeline_mode<synchronous>, transform_indices = @transform_2, window_bounds = array<i64: 1, 128>}, {transform_indices = @transform_3, window_bounds = array<i64: 8, 128>}]} {
    %c0 = arith.constant 0 : index
    %c0_0 = arith.constant 0 : index
    %0 = vector.load %arg1[%c0, %c0_0] : memref<8x128xf32, #tpu.memory_space<vmem>>, vector<8x128xf32>
    %c0_1 = arith.constant 0 : index
    %c0_2 = arith.constant 0 : index
    %1 = vector.load %arg2[%c0_1, %c0_2] : memref<128x128xf32, #tpu.memory_space<vmem>>, vector<128x128xf32>
    %cst = arith.constant dense<0.000000e+00> : vector<8x128xf32>
    %2 = tpu.matmul %0, %1, %cst {dimension_numbers = #tpu.dot_dimension_numbers<[1], [0], [0], [1], [0, 0, 1, 1], [], []>} : vector<8x128xf32>, vector<128x128xf32>, vector<8x128xf32> -> vector<8x128xf32>
    %c0_3 = arith.constant 0 : index
    %c0_4 = arith.constant 0 : index
    %3 = vector.load %arg3[%c0_3, %c0_4] : memref<1x128xf32, #tpu.memory_space<vmem>>, vector<1x128xf32>
    %4 = vector.broadcast %3 : vector<1x128xf32> to vector<8x128xf32>
    %5 = arith.addf %2, %4 : vector<8x128xf32>
    %c0_5 = arith.constant 0 : index
    %c0_6 = arith.constant 0 : index
    %6 = vector.load %arg4[%c0_5, %c0_6] : memref<8x128xf32, #tpu.memory_space<vmem>>, vector<8x128xf32>
    tpu.vector_store %arg4[%c0_5, %c0_6], %5 {strides = array<i32>} : memref<8x128xf32, #tpu.memory_space<vmem>>, vector<8x128xf32>,
    return
  }
  func.func @transform_0(%arg0: i32) -> (i32, i32) {
    %c0_i32 = arith.constant 0 : i32
    %c0_i32_0 = arith.constant 0 : i32
    return %arg0, %c0_i32 : i32, i32
  }
  func.func @transform_1(%arg0: i32) -> (i32, i32) {
    %c0_i32 = arith.constant 0 : i32
    %c0_i32_0 = arith.constant 0 : i32
    %c0_i32_1 = arith.constant 0 : i32
    return %c0_i32, %c0_i32_0 : i32, i32
  }
  func.func @transform_2(%arg0: i32) -> (i32, i32) {
    %c0_i32 = arith.constant 0 : i32
    %c0_i32_0 = arith.constant 0 : i32
    %c0_i32_1 = arith.constant 0 : i32
    return %c0_i32, %c0_i32_0 : i32, i32
  }
  func.func @transform_3(%arg0: i32) -> (i32, i32) {
    %c0_i32 = arith.constant 0 : i32
    %c0_i32_0 = arith.constant 0 : i32
    return %arg0, %c0_i32 : i32, i32
  }
}

</mosaic_0001>

<bundles_post_ra>
// kernel: _forward_impl.1
= control target key start
LH: loop header
LB: loop body
LE: loop exit
PB: predicated region body
PF: predicated region fallthrough
CT: control target
= control target key end

     0   :  { %8 = vsyncpa [#allocation3], 0  ;;  %s270_s12 = smov [#allocation2]   ;;  %s317_s0 = inlined_call_operand.vmem [shape: f32[4,128], index: 0, kind: input, shape index: {}]   ;;  %s318_s1 = inlined_call_operand.hbm [shape: f32[128,128], index: 1, kind: input, shape index: {}]   ;;  %s319_s2 = inlined_call_operand.vmem [shape: f32[1,128], index: 2, kind: input, shape index: {}]   ;;  %s320_s3 = inlined_call_operand.vmem [shape: f32[4,128], index: 3, kind: output, shape index: {}]  }
   0x1   :  { %s16_s13 = sshll.u32 %s270_s12, 4  ;;  %s246_s16 = scalar_lea.hbm %s318_s1, 2048  ;;  %s17_s13 = int_to_ptr.vmem [resolvable:$true] %s16_s13 }
   0x2   :  { %p247_p0 = scmp.ne.s32.totalorder %s318_s1, %s246_s16  ;;  %p250_p1 = scmp.lt.u32.totalorder %s246_s16, %s318_s1 }
   0x4   :  { %p252_p2 = pnand %p250_p1, %p247_p0 }
   0x6   :  { %255 = shalt.err (!%p252_p2)
}
   0x7   :  { %s256_s21 = scalar_lea.vmem %s17_s13, 2048  ;;  %p261_p4 = scmp.lt.s32.totalorder %s17_s13, %s17_s13 }
   0x8   :  { %p257_p3 = scmp.ne.s32.totalorder %s17_s13, %s256_s21  ;;  %p262_p5 = scmp.lt.s32.totalorder %s256_s21, %s256_s21 }
   0xa   :  { %p263_p6 = por %p262_p5, %p261_p4 }
   0xc   :  { %p264_p7 = pnand %p263_p6, %p257_p3 }
   0xe   :  { %267 = shalt.err (!%p264_p7)
}
   0xf   :  { %s271_s22 = smov 128   ;;  %s272_s23 = smov 8  }
  0x10   :  { %22 = dma.hbm_to_vmem [thread:$0]  %s318_s1, 2048, %s17_s13, [#allocation3], %s271_s22, %s271_s22, %s272_s23  }
  0x11   :  { %268 = dma.done.wait [#allocation3], 2048  }
  0x12   :  { %269 = vsyncadd [#allocation3], 4294965248  ;;  %v273_v0 = vmov 0.0|0.0   ;;  %vm274_vm0 = vmmov 0   ;;  %v275_v1 = vmov 0.0   ;;  %v29_v2 = vld [vmem:[#allocation2] sm:$0xff] }
  0x13   :  { %216 = vmatprep.subr.bf16.mxu0 %v273_v0  ;;  %213 = vmatprep.mubr.msk.f32.mxu0 %vm274_vm0, %v275_v1  ;;  %v30_v3 = vld [vmem:[#allocation2 + $0x8] sm:$0xff]  ;;  %v31_v4 = vld [vmem:[#allocation2 + $0x10] sm:$0xff]  ;;  %v32_v6 = vld [vmem:[#allocation2 + $0x18] sm:$0xff] }
  0x14   :  { %v217_v5 = vpack.c.bf16 %v30_v3, %v29_v2  ;;  %v220_v7 = vpack.c.bf16 %v32_v6, %v31_v4  ;;  %v33_v8 = vld [vmem:[#allocation2 + $0x20] sm:$0xff]  ;;  %v34_v9 = vld [vmem:[#allocation2 + $0x28] sm:$0xff]  ;;  %v35_v11 = vld [vmem:[#allocation2 + $0x30] sm:$0xff] }
  0x15   :  { %v223_v10 = vpack.c.bf16 %v34_v9, %v33_v8  ;;  %v36_v12 = vld [vmem:[#allocation2 + $0x38] sm:$0xff]  ;;  %v37_v14 = vld [vmem:[#allocation2 + $0x40] sm:$0xff]  ;;  %v38_v15 = vld [vmem:[#allocation2 + $0x48] sm:$0xff] }
  0x16   :  { %218 = vmatpush3.bf16.msra.mxu0 %v217_v5  ;;  %v226_v13 = vpack.c.bf16 %v36_v12, %v35_v11  ;;  %v229_v16 = vpack.c.bf16 %v38_v15, %v37_v14  ;;  %v39_v17 = vld [vmem:[#allocation2 + $0x50] sm:$0xff]  ;;  %v40_v18 = vld [vmem:[#allocation2 + $0x58] sm:$0xff]  ;;  %v41_v20 = vld [vmem:[#allocation2 + $0x60] sm:$0xff] }
  0x17   :  { %219 = vmatprep.subr.bf16.mxu0 %v273_v0  ;;  %v232_v19 = vpack.c.bf16 %v40_v18, %v39_v17  ;;  %v42_v21 = vld [vmem:[#allocation2 + $0x68] sm:$0xff]  ;;  %v43_v23 = vld [vmem:[#allocation2 + $0x70] sm:$0xff]  ;;  %v44_v24 = vld [vmem:[#allocation2 + $0x78] sm:$0xff] }
  0x18   :  { %v235_v22 = vpack.c.bf16 %v42_v21, %v41_v20  ;;  %v238_v25 = vpack.c.bf16 %v44_v24, %v43_v23  ;;  %v28_v26 = vld [vmem:[%s317_s0] sm:$0xff] }
  0x19   :  { %v163_v27 = vld [vmem:[%s319_s2] ss:$0 sm:$0xff] }
  0x1a   :  { %221 = vmatpush3.bf16.msra.mxu0 %v220_v7 }
  0x1b   :  { %222 = vmatprep.subr.bf16.mxu0 %v273_v0 }
  0x1e   :  { %224 = vmatpush3.bf16.msra.mxu0 %v223_v10 }
  0x1f   :  { %225 = vmatprep.subr.bf16.mxu0 %v273_v0 }
  0x22   :  { %227 = vmatpush3.bf16.msra.mxu0 %v226_v13 }
  0x23   :  { %228 = vmatprep.subr.bf16.mxu0 %v273_v0 }
  0x26   :  { %230 = vmatpush3.bf16.msra.mxu0 %v229_v16 }
  0x27   :  { %231 = vmatprep.subr.bf16.mxu0 %v273_v0 }
  0x2a   :  { %233 = vmatpush3.bf16.msra.mxu0 %v232_v19 }
  0x2b   :  { %234 = vmatprep.subr.bf16.mxu0 %v273_v0 }
  0x2e   :  { %236 = vmatpush3.bf16.msra.mxu0 %v235_v22 }
  0x2f   :  { %237 = vmatprep.subr.bf16.mxu0 %v273_v0 }
  0x32   :  { %239 = vmatpush3.bf16.msra.mxu0 %v238_v25 }
  0x35   :  { %214 = vmatmul.mubr.f32.vlgmr.msra.gmra.mrb[0].mxu0 %v28_v26 }
 0x108   :  { %v118_v28 = vpop.f32.mrb[0].mxu0 }
 0x109   :  { %v119_v29 = vadd.f32 %v163_v27, %v118_v28  ;;  %v215_v30 = vpop.f32.mrb[1].mxu0 }
 0x10b   :  { %122 = vst [vmem:[#allocation4] sm:$0xff] %v119_v29 }
 0x112   :  { %v140_v31 = vld [vmem:[#allocation4] sm:$0xf] }
 0x113   :  { %141 = vst [vmem:[%s320_s3] sm:$0xf] %v140_v31 }
 0x114   :  { %158 = vsyncpa [#allocation3], 1 }

</bundles_post_ra>
